<compile_context>
chip_gen: v5e
topology: v5e:2x2
jax: 0.10.0
libtpu: 0.0.40
codegen_flags: <defaults>
</compile_context>

<pallas_src>
import jax
import jax.numpy as jnp
from jax import lax
from jax.experimental import pallas as pl
from jax.experimental.pallas import tpu as pltpu

_BN_EPS = 1e-5
_INV_SQRT2 = 0.7071067811865476


def _round_up(x, m):
    return ((x + m - 1) // m) * m


def _stats_kernel(x_ref, w_ref, sum_ref, sumsq_ref):
    # x_ref:   (C_in_p, TN)       input tile (lane-dense along N)
    # w_ref:   (C_out_p, C_in_p)  VMEM-resident across all grid steps
    # sum_ref / sumsq_ref: (C_out_p, 1) f32 accumulators, resident across grid.
    @pl.when(pl.program_id(0) == 0)
    def _init():
        sum_ref[...] = jnp.zeros_like(sum_ref)
        sumsq_ref[...] = jnp.zeros_like(sumsq_ref)

    # 1x1 conv == matmul; operands kept in stored dtype (bf16 fast path), f32 acc.
    y = jnp.dot(w_ref[...], x_ref[...], preferred_element_type=jnp.float32)
    sum_ref[...] += jnp.sum(y, axis=1, keepdims=True)
    sumsq_ref[...] += jnp.sum(y * y, axis=1, keepdims=True)


def _apply_kernel(x_ref, w_ref, scale_ref, shift_ref, o_ref):
    # x_ref:     (C_in_p, TN)
    # w_ref:     (C_out_p, C_in_p)
    # scale_ref: (C_out_p, 1) f32   = gamma * rsqrt(var + eps)
    # shift_ref: (C_out_p, 1) f32   = beta - mean * scale
    # o_ref:     (C_out_p, TN)
    y = jnp.dot(w_ref[...], x_ref[...], preferred_element_type=jnp.float32)
    z = y * scale_ref[...] + shift_ref[...]            # BN folded into one FMA
    out = 0.5 * z * (1.0 + lax.erf(z * _INV_SQRT2))    # exact GELU (PyTorch default)
    o_ref[...] = out.astype(o_ref.dtype)


@jax.jit
def conv1x1_forward(x, weight, gamma, beta):
    """x: (B, L, C_in); weight: (C_out, C_in); gamma/beta: (C_out,)."""
    B, L, C_in = x.shape
    C_out = weight.shape[0]
    N = B * L

    # Channels-first lane-dense layout (layout plumbing in the wrapper).
    x_t = x.reshape(N, C_in).T                                    # (C_in, N)

    # Pad channel dims to sublane multiples; pad N to a multiple of the tile.
    C_in_p = _round_up(C_in, 8)
    C_out_p = _round_up(C_out, 8)

    itemsize = jnp.dtype(x.dtype).itemsize
    # per-column VMEM: double-buffered in/out tiles + f32 intermediates.
    bytes_per_col = 2 * (C_in_p + C_out_p) * itemsize + 2 * C_out_p * 4
    tn_cap = max(128, min(2048, (6 * 1024 * 1024 // bytes_per_col) // 128 * 128))
    TN = min(tn_cap, _round_up(N, 128))
    num_tiles = -(-N // TN)
    N_pad = num_tiles * TN

    x_t = jnp.pad(x_t, ((0, C_in_p - C_in), (0, N_pad - N)))      # zeros: no effect on stats
    w_p = jnp.pad(weight, ((0, C_out_p - C_out), (0, C_in_p - C_in)))  # (C_out_p, C_in_p)

    # ---- Phase 1: global BatchNorm statistics (sum and sum of squares of y).
    sums, sumsqs = pl.pallas_call(
        _stats_kernel,
        out_shape=(jax.ShapeDtypeStruct((C_out_p, 1), jnp.float32),
                   jax.ShapeDtypeStruct((C_out_p, 1), jnp.float32)),
        grid=(num_tiles,),
        in_specs=[
            pl.BlockSpec((C_in_p, TN), lambda i: (0, i)),
            pl.BlockSpec((C_out_p, C_in_p), lambda i: (0, 0)),
        ],
        out_specs=(pl.BlockSpec((C_out_p, 1), lambda i: (0, 0)),
                   pl.BlockSpec((C_out_p, 1), lambda i: (0, 0))),
        compiler_params=pltpu.CompilerParams(
            dimension_semantics=("arbitrary",)),
    )(x_t, w_p)

    # Fold BN into per-channel scale/shift (tiny, plain XLA ops).
    inv_n = jnp.float32(1.0 / N)
    mean = sums * inv_n                                           # (C_out_p, 1)
    var = jnp.maximum(sumsqs * inv_n - mean * mean, 0.0)          # biased batch var
    gamma_p = jnp.pad(gamma.astype(jnp.float32), (0, C_out_p - C_out)).reshape(C_out_p, 1)
    beta_p = jnp.pad(beta.astype(jnp.float32), (0, C_out_p - C_out)).reshape(C_out_p, 1)
    scale = gamma_p * lax.rsqrt(var + _BN_EPS)
    shift = beta_p - mean * scale

    # ---- Phase 2: normalize + GELU (fully parallel over N tiles).
    out_t = pl.pallas_call(
        _apply_kernel,
        out_shape=jax.ShapeDtypeStruct((C_out_p, N_pad), x.dtype),
        grid=(num_tiles,),
        in_specs=[
            pl.BlockSpec((C_in_p, TN), lambda i: (0, i)),
            pl.BlockSpec((C_out_p, C_in_p), lambda i: (0, 0)),
            pl.BlockSpec((C_out_p, 1), lambda i: (0, 0)),
            pl.BlockSpec((C_out_p, 1), lambda i: (0, 0)),
        ],
        out_specs=pl.BlockSpec((C_out_p, TN), lambda i: (0, i)),
        compiler_params=pltpu.CompilerParams(
            dimension_semantics=("parallel",)),
    )(x_t, w_p, scale, shift)

    return out_t[:C_out, :N].T.reshape(B, L, C_out)


def xavier_normal_conv1d_weight(key, out_channels, in_channels):
    """Matches nn.init.xavier_normal_ on a Conv1d weight of shape (C_out, C_in, 1)."""
    fan_in = in_channels * 1
    fan_out = out_channels * 1
    std = jnp.sqrt(2.0 / (fan_in + fan_out))
    return std * jax.random.normal(key, (out_channels, in_channels), dtype=jnp.float32)


def _reference(x, weight, gamma, beta):
    """Pure-JAX reference of the PyTorch module forward (training-mode BN)."""
    y = jnp.einsum("blc,oc->blo", x.astype(jnp.float32), weight.astype(jnp.float32))
    mean = jnp.mean(y, axis=(0, 1))
    var = jnp.mean((y - mean) ** 2, axis=(0, 1))
    y_bn = gamma * (y - mean) * lax.rsqrt(var + _BN_EPS) + beta
    return 0.5 * y_bn * (1.0 + lax.erf(y_bn * _INV_SQRT2))


if __name__ == "__main__":
    B, L, C_in, C_out = 2, 16, 4, 8

    key = jax.random.PRNGKey(0)
    k_x, k_w = jax.random.split(key)

    x = jax.random.normal(k_x, (B, L, C_in), dtype=jnp.float32)
    weight = xavier_normal_conv1d_weight(k_w, C_out, C_in)   # Conv1d weight (no bias)
    gamma = jnp.ones((C_out,), dtype=jnp.float32)            # BatchNorm1d weight init
    beta = jnp.zeros((C_out,), dtype=jnp.float32)            # BatchNorm1d bias init

    out = conv1x1_forward(x, weight, gamma, beta)
    jax.block_until_ready(out)

    assert out.shape == (B, L, C_out), out.shape
    assert bool(jnp.all(jnp.isfinite(out)))

    ref = _reference(x, weight, gamma, beta)
    max_err = float(jnp.max(jnp.abs(out.astype(jnp.float32) - ref)))
    assert max_err < 1e-4, f"max abs error vs reference: {max_err}"

    print("KERNEL_OK")
</pallas_src>

<mosaic_0001>
module attributes {stable_mosaic.version = 11 : i64} {
  func.func @_apply_kernel(%arg0: i32, %arg1: memref<8x128xf32, #tpu.memory_space<vmem>>, %arg2: memref<8x8xf32, #tpu.memory_space<vmem>>, %arg3: memref<8x1xf32, #tpu.memory_space<vmem>>, %arg4: memref<8x1xf32, #tpu.memory_space<vmem>>, %arg5: memref<8x128xf32, #tpu.memory_space<vmem>>) attributes {dimension_semantics = [#tpu.dimension_semantics<parallel>], iteration_bounds = array<i64: 1>, scalar_prefetch = 0 : i64, scratch_operands = 0 : i64, tpu.core_type = #tpu.core_type<tc>, window_params = [{transform_indices = @transform_0, window_bounds = array<i64: 8, 128>}, {pipeline_mode = #tpu.pipeline_mode<synchronous>, transform_indices = @transform_1, window_bounds = array<i64: 8, 8>}, {pipeline_mode = #tpu.pipeline_mode<synchronous>, transform_indices = @transform_2, window_bounds = array<i64: 8, 1>}, {pipeline_mode = #tpu.pipeline_mode<synchronous>, transform_indices = @transform_3, window_bounds = array<i64: 8, 1>}, {transform_indices = @transform_4, window_bounds = array<i64: 8, 128>}]} {
    %c0 = arith.constant 0 : index
    %c0_0 = arith.constant 0 : index
    %0 = vector.load %arg2[%c0, %c0_0] : memref<8x8xf32, #tpu.memory_space<vmem>>, vector<8x8xf32>
    %c0_1 = arith.constant 0 : index
    %c0_2 = arith.constant 0 : index
    %1 = vector.load %arg1[%c0_1, %c0_2] : memref<8x128xf32, #tpu.memory_space<vmem>>, vector<8x128xf32>
    %cst = arith.constant dense<0.000000e+00> : vector<8x128xf32>
    %2 = tpu.matmul %0, %1, %cst {dimension_numbers = #tpu.dot_dimension_numbers<[1], [0], [0], [1], [0, 0, 1, 1], [], []>} : vector<8x8xf32>, vector<8x128xf32>, vector<8x128xf32> -> vector<8x128xf32>
    %c0_3 = arith.constant 0 : index
    %c0_4 = arith.constant 0 : index
    %3 = vector.load %arg3[%c0_3, %c0_4] : memref<8x1xf32, #tpu.memory_space<vmem>>, vector<8x1xf32>
    %4 = vector.broadcast %3 : vector<8x1xf32> to vector<8x128xf32>
    %5 = arith.mulf %2, %4 : vector<8x128xf32>
    %c0_5 = arith.constant 0 : index
    %c0_6 = arith.constant 0 : index
    %6 = vector.load %arg4[%c0_5, %c0_6] : memref<8x1xf32, #tpu.memory_space<vmem>>, vector<8x1xf32>
    %7 = vector.broadcast %6 : vector<8x1xf32> to vector<8x128xf32>
    %8 = arith.addf %5, %7 : vector<8x128xf32>
    %cst_7 = arith.constant 5.000000e-01 : f32
    %9 = vector.broadcast %cst_7 : f32 to vector<8x128xf32>
    %10 = arith.mulf %9, %8 : vector<8x128xf32>
    %cst_8 = arith.constant 0.707106769 : f32
    %11 = vector.broadcast %cst_8 : f32 to vector<8x128xf32>
    %12 = arith.mulf %8, %11 : vector<8x128xf32>
    %13 = math.erf %12 : vector<8x128xf32>
    %cst_9 = arith.constant 1.000000e+00 : f32
    %14 = vector.broadcast %cst_9 : f32 to vector<8x128xf32>
    %15 = arith.addf %14, %13 : vector<8x128xf32>
    %16 = arith.mulf %10, %15 : vector<8x128xf32>
    %c0_10 = arith.constant 0 : index
    %c0_11 = arith.constant 0 : index
    %17 = vector.load %arg5[%c0_10, %c0_11] : memref<8x128xf32, #tpu.memory_space<vmem>>, vector<8x128xf32>
    tpu.vector_store %arg5[%c0_10, %c0_11], %16 {strides = array<i32>} : memref<8x128xf32, #tpu.memory_space<vmem>>, vector<8x128xf32>,
    return
  }
  func.func @transform_0(%arg0: i32) -> (i32, i32) {
    %c0_i32 = arith.constant 0 : i32
    %c0_i32_0 = arith.constant 0 : i32
    return %c0_i32, %arg0 : i32, i32
  }
  func.func @transform_1(%arg0: i32) -> (i32, i32) {
    %c0_i32 = arith.constant 0 : i32
    %c0_i32_0 = arith.constant 0 : i32
    %c0_i32_1 = arith.constant 0 : i32
    return %c0_i32, %c0_i32_0 : i32, i32
  }
  func.func @transform_2(%arg0: i32) -> (i32, i32) {
    %c0_i32 = arith.constant 0 : i32
    %c0_i32_0 = arith.constant 0 : i32
    %c0_i32_1 = arith.constant 0 : i32
    return %c0_i32, %c0_i32_0 : i32, i32
  }
  func.func @transform_3(%arg0: i32) -> (i32, i32) {
    %c0_i32 = arith.constant 0 : i32
    %c0_i32_0 = arith.constant 0 : i32
    %c0_i32_1 = arith.constant 0 : i32
    return %c0_i32, %c0_i32_0 : i32, i32
  }
  func.func @transform_4(%arg0: i32) -> (i32, i32) {
    %c0_i32 = arith.constant 0 : i32
    %c0_i32_0 = arith.constant 0 : i32
    return %c0_i32, %arg0 : i32, i32
  }
}

module attributes {stable_mosaic.version = 11 : i64} {
  func.func @_stats_kernel(%arg0: i32, %arg1: memref<8x128xf32, #tpu.memory_space<vmem>>, %arg2: memref<8x8xf32, #tpu.memory_space<vmem>>, %arg3: memref<8x1xf32, #tpu.memory_space<vmem>>, %arg4: memref<8x1xf32, #tpu.memory_space<vmem>>) attributes {dimension_semantics = [#tpu.dimension_semantics<arbitrary>], iteration_bounds = array<i64: 1>, scalar_prefetch = 0 : i64, scratch_operands = 0 : i64, tpu.core_type = #tpu.core_type<tc>, window_params = [{transform_indices = @transform_0, window_bounds = array<i64: 8, 128>}, {pipeline_mode = #tpu.pipeline_mode<synchronous>, transform_indices = @transform_1, window_bounds = array<i64: 8, 8>}, {pipeline_mode = #tpu.pipeline_mode<synchronous>, transform_indices = @transform_2, window_bounds = array<i64: 8, 1>}, {pipeline_mode = #tpu.pipeline_mode<synchronous>, transform_indices = @transform_3, window_bounds = array<i64: 8, 1>}]} {
    %c0_i32 = arith.constant 0 : i32
    %0 = arith.cmpi eq, %arg0, %c0_i32 : i32
    %1 = arith.extui %0 : i1 to i32
    %c0_i32_0 = arith.constant 0 : i32
    %2 = arith.cmpi ne, %1, %c0_i32_0 : i32
    scf.if %2 {
      %cst_14 = arith.constant 0.000000e+00 : f32
      %17 = vector.broadcast %cst_14 : f32 to vector<8x1xf32>
      %c0_15 = arith.constant 0 : index
      %c0_16 = arith.constant 0 : index
      %18 = vector.load %arg3[%c0_15, %c0_16] : memref<8x1xf32, #tpu.memory_space<vmem>>, vector<8x1xf32>
      tpu.vector_store %arg3[%c0_15, %c0_16], %17 {strides = array<i32>} : memref<8x1xf32, #tpu.memory_space<vmem>>, vector<8x1xf32>,
      %cst_17 = arith.constant 0.000000e+00 : f32
      %19 = vector.broadcast %cst_17 : f32 to vector<8x1xf32>
      %c0_18 = arith.constant 0 : index
      %c0_19 = arith.constant 0 : index
      %20 = vector.load %arg4[%c0_18, %c0_19] : memref<8x1xf32, #tpu.memory_space<vmem>>, vector<8x1xf32>
      tpu.vector_store %arg4[%c0_18, %c0_19], %19 {strides = array<i32>} : memref<8x1xf32, #tpu.memory_space<vmem>>, vector<8x1xf32>,
    } else {
    }
    %c0 = arith.constant 0 : index
    %c0_1 = arith.constant 0 : index
    %3 = vector.load %arg2[%c0, %c0_1] : memref<8x8xf32, #tpu.memory_space<vmem>>, vector<8x8xf32>
    %c0_2 = arith.constant 0 : index
    %c0_3 = arith.constant 0 : index
    %4 = vector.load %arg1[%c0_2, %c0_3] : memref<8x128xf32, #tpu.memory_space<vmem>>, vector<8x128xf32>
    %cst = arith.constant dense<0.000000e+00> : vector<8x128xf32>
    %5 = tpu.matmul %3, %4, %cst {dimension_numbers = #tpu.dot_dimension_numbers<[1], [0], [0], [1], [0, 0, 1, 1], [], []>} : vector<8x8xf32>, vector<8x128xf32>, vector<8x128xf32> -> vector<8x128xf32>
    %c0_4 = arith.constant 0 : index
    %c0_5 = arith.constant 0 : index
    %6 = vector.load %arg3[%c0_4, %c0_5] : memref<8x1xf32, #tpu.memory_space<vmem>>, vector<8x1xf32>
    %cst_6 = arith.constant dense<0.000000e+00> : vector<8xf32>
    %7 = vector.multi_reduction <add>, %5, %cst_6 [1] : vector<8x128xf32> to vector<8xf32>
    %8 = vector.shape_cast %7 : vector<8xf32> to vector<8x1xf32>
    %9 = arith.addf %6, %8 : vector<8x1xf32>
    %c0_7 = arith.constant 0 : index
    %c0_8 = arith.constant 0 : index
    %10 = vector.load %arg3[%c0_7, %c0_8] : memref<8x1xf32, #tpu.memory_space<vmem>>, vector<8x1xf32>
    tpu.vector_store %arg3[%c0_7, %c0_8], %9 {strides = array<i32>} : memref<8x1xf32, #tpu.memory_space<vmem>>, vector<8x1xf32>,
    %c0_9 = arith.constant 0 : index
    %c0_10 = arith.constant 0 : index
    %11 = vector.load %arg4[%c0_9, %c0_10] : memref<8x1xf32, #tpu.memory_space<vmem>>, vector<8x1xf32>
    %12 = arith.mulf %5, %5 : vector<8x128xf32>
    %cst_11 = arith.constant dense<0.000000e+00> : vector<8xf32>
    %13 = vector.multi_reduction <add>, %12, %cst_11 [1] : vector<8x128xf32> to vector<8xf32>
    %14 = vector.shape_cast %13 : vector<8xf32> to vector<8x1xf32>
    %15 = arith.addf %11, %14 : vector<8x1xf32>
    %c0_12 = arith.constant 0 : index
    %c0_13 = arith.constant 0 : index
    %16 = vector.load %arg4[%c0_12, %c0_13] : memref<8x1xf32, #tpu.memory_space<vmem>>, vector<8x1xf32>
    tpu.vector_store %arg4[%c0_12, %c0_13], %15 {strides = array<i32>} : memref<8x1xf32, #tpu.memory_space<vmem>>, vector<8x1xf32>,
    return
  }
  func.func @transform_0(%arg0: i32) -> (i32, i32) {
    %c0_i32 = arith.constant 0 : i32
    %c0_i32_0 = arith.constant 0 : i32
    return %c0_i32, %arg0 : i32, i32
  }
  func.func @transform_1(%arg0: i32) -> (i32, i32) {
    %c0_i32 = arith.constant 0 : i32
    %c0_i32_0 = arith.constant 0 : i32
    %c0_i32_1 = arith.constant 0 : i32
    return %c0_i32, %c0_i32_0 : i32, i32
  }
  func.func @transform_2(%arg0: i32) -> (i32, i32) {
    %c0_i32 = arith.constant 0 : i32
    %c0_i32_0 = arith.constant 0 : i32
    %c0_i32_1 = arith.constant 0 : i32
    return %c0_i32, %c0_i32_0 : i32, i32
  }
  func.func @transform_3(%arg0: i32) -> (i32, i32) {
    %c0_i32 = arith.constant 0 : i32
    %c0_i32_0 = arith.constant 0 : i32
    %c0_i32_1 = arith.constant 0 : i32
    return %c0_i32, %c0_i32_0 : i32, i32
  }
}

</mosaic_0001>

<bundles_post_ra>
// kernel: conv1x1_forward.3
= control target key start
LH: loop header
LB: loop body
LE: loop exit
PB: predicated region body
PF: predicated region fallthrough
CT: control target
= control target key end

     0   :  { %vm19_vm0 = vcmask 64512   ;;  %v112_v0 = vmov 0   ;;  %s153_s2 = inlined_call_operand.vmem [shape: f32[8,1], index: 2, kind: input, shape index: {}]   ;;  %s154_s0 = inlined_call_operand.vmem [shape: f32[8,128], index: 0, kind: input, shape index: {}]   ;;  %s155_s1 = inlined_call_operand.vmem [shape: f32[8,8], index: 1, kind: input, shape index: {}]   ;;  %s156_s3 = inlined_call_operand.vmem [shape: f32[8,1], index: 3, kind: input, shape index: {}]   ;;  %s157_s4 = inlined_call_operand.vmem [shape: f32[8,128], index: 4, kind: output, shape index: {}]  }
   0x1   :  { %109 = vset.pattern.permute.xlu0 %v112_v0  ;;  %v43_v1 = vld [vmem:[%s153_s2] sm:$0xff] }
   0x2   :  { %v18_v2 = vld [vmem:[%s154_s0] sm:$0xff]  ;;  %46 = vperm.xlu0 %109, %v43_v1  }
   0x3   :  { %v17_v3 = vld [vmem:[%s155_s1] sm:$0xff]  ;;  %38 = vmatpush.msra.mxu0 %v18_v2 }
   0x4   :  { %106 = vmatmul.msk.f32.vlgmr.msra.gmra.mxu0 %vm19_vm0, %v17_v3  ;;  %v50_v4 = vld [vmem:[%s156_s3] sm:$0xff] }
   0xa   :  { %53 = vperm.xlu0 %109, %v50_v4  }
  0x74   :  { %v47_v5 = vpop.permute.xlu0 %46 }
  0x7c   :  { %v54_v8 = vpop.permute.xlu0 %53 }
  0x81   :  { %v40_v6 = vpop.f32.mrf.mxu0 }
  0x82   :  { %v49_v7 = vmul.f32 %v47_v5, %v40_v6 }
  0x84   :  { %v56_v9 = vadd.f32 %v54_v8, %v49_v7 }
  0x86   :  { %v58_v10 = vmul.f32 0.70710677, %v56_v9  ;;  %v57_v46 = vmul.f32 0.5, %v56_v9 }
  0x88   :  { %v59_v11 = vmul.f32 %v58_v10, %v58_v10 }
  0x8a   :  { %v60_v12 = vmin.f32 %v59_v11, 16.0 }
  0x8c   :  { %v61_v13 = vmul.f32 2.1237322e-06, %v60_v12  ;;  %v72_v14 = vmul.f32 3.8918573e-05, %v60_v12 }
  0x8e   :  { %v62_v15 = vadd.f32 0.00028619796, %v61_v13  ;;  %v73_v16 = vadd.f32 0.001143296, %v72_v14 }
  0x90   :  { %v63_v17 = vmul.f32 %v62_v15, %v60_v12  ;;  %v74_v18 = vmul.f32 %v73_v16, %v60_v12 }
  0x92   :  { %v75_v19 = vadd.f32 0.014752088, %v74_v18  ;;  %v64_v20 = vadd.f32 0.0036580483, %v63_v17 }
  0x94   :  { %v76_v21 = vmul.f32 %v75_v19, %v60_v12  ;;  %v65_v23 = vmul.f32 %v64_v20, %v60_v12 }
  0x96   :  { %v77_v22 = vadd.f32 0.112945676, %v76_v21  ;;  %v66_v26 = vadd.f32 0.05243302, %v65_v23 }
  0x98   :  { %v78_v24 = vmul.f32 %v77_v22, %v60_v12  ;;  %v67_v29 = vmul.f32 %v66_v26, %v60_v12 }
  0x9a   :  { %v79_v25 = vadd.f32 0.4994258, %v78_v24  ;;  %v68_v30 = vadd.f32 0.18741608, %v67_v29 }
  0x9c   :  { %v80_v27 = vmul.f32 %v79_v25, %v60_v12  ;;  %v69_v32 = vmul.f32 %v68_v30, %v60_v12 }
  0x9e   :  { %v81_v28 = vadd.f32 1.0, %v80_v27  ;;  %v70_v36 = vadd.f32 1.1283791, %v69_v32 }
  0xa0   :  { %110 = vrcp.f32 %v81_v28  ;;  %v93_v35 = vand.u32 2147483648, %v81_v28  ;;  %v91_v38 = vand.u32 2147483647, %v81_v28  ;;  %vm87_vm2 = vweird.f32 %v81_v28 }
  0xa1   :  { %v71_v41 = vmul.f32 %v70_v36, %v58_v10 }
  0xa2   :  { %v94_v40 = vor.u32 1.1754944e-38, %v93_v35  ;;  %vm92_vm4 = vcmp.eq.f32.partialorder %v91_v38, 8.507059e+37 }
  0xa6   :  { %v111_v31 = vpop.eup %110 }
  0xa7   :  { %v83_v33 = vmul.f32 %v111_v31, %v81_v28  ;;  %vm88_vm1 = vweird.f32 %v111_v31 }
  0xa8   :  { %vm89_vm3 = vmor %vm87_vm2, %vm88_vm1 }
  0xa9   :  { %v84_v34 = vsub.f32 1.0, %v83_v33 }
  0xab   :  { %v85_v37 = vmul.f32 %v111_v31, %v84_v34 }
  0xad   :  { %v86_v39 = vadd.f32 %v111_v31, %v85_v37 }
  0xaf   :  { %v90_v42 = vsel %vm89_vm3, %v111_v31, %v86_v39 }
  0xb0   :  { %v95_v43 = vsel %vm92_vm4, %v94_v40, %v90_v42 }
  0xb1   :  { %v96_v44 = vmul.f32 %v95_v43, %v71_v41 }
  0xb3   :  { %v107_v45 = vclamps-f32 %v96_v44, 1.0 }
  0xb5   :  { %v99_v47 = vadd.f32 1.0, %v107_v45 }
  0xb7   :  { %v100_v48 = vmul.f32 %v99_v47, %v57_v46 }
  0xb9   :  { %101 = vst [vmem:[%s157_s4] sm:$0xff] %v100_v48 }

// kernel: conv1x1_forward.2
= control target key start
LH: loop header
LB: loop body
LE: loop exit
PB: predicated region body
PF: predicated region fallthrough
CT: control target
= control target key end

     0   :  { %vm22_vm0 = vcmask 64512   ;;  %vm17_vm1 = vcmask 7168   ;;  %v68_v2 = vmov 0.0   ;;  %s117_s0 = inlined_call_operand.vmem [shape: f32[8,128], index: 0, kind: input, shape index: {}]   ;;  %s118_s1 = inlined_call_operand.vmem [shape: f32[8,8], index: 1, kind: input, shape index: {}]   ;;  %s119_s2 = inlined_call_operand.vmem [shape: f32[8,1], index: 2, kind: output, shape index: {0}]   ;;  %s120_s3 = inlined_call_operand.vmem [shape: f32[8,1], index: 3, kind: output, shape index: {1}]  }
   0x1   :  { %v21_v0 = vld [vmem:[%s117_s0] sm:$0xff]  ;;  %18 = vst.msk [vmem:[%s119_s2] sm:$0xff] %vm17_vm1, %v68_v2 }
   0x2   :  { %v20_v1 = vld [vmem:[%s118_s1] sm:$0xff]  ;;  %41 = vmatpush.msra.mxu0 %v21_v0  ;;  %19 = vst.msk [vmem:[%s120_s3] sm:$0xff] %vm17_vm1, %v68_v2 }
   0x3   :  { %66 = vmatmul.msk.f32.vlgmr.msra.gmra.mxu0 %vm22_vm0, %v20_v1 }
   0x8   :  { %v46_v5 = vld [vmem:[%s119_s2] sm:$0xff] }
   0x9   :  { %v52_v8 = vld [vmem:[%s120_s3] sm:$0xff] }
  0x80   :  { %v43_v3 = vpop.f32.mrf.mxu0 }
  0x81   :  { %47 = vadd.xlane.f32.xlu0 %v43_v3  ;;  %v53_v4 = vmul.f32 %v43_v3, %v43_v3 }
  0x89   :  { %54 = vadd.xlane.f32.xlu0 %v53_v4 }
  0xf4   :  { %v48_v6 = vpop.xlane.xlu0 %47 }
  0xf5   :  { %v49_v7 = vadd.f32 %v48_v6, %v46_v5 }
  0xf7   :  { %51 = vst.msk [vmem:[%s119_s2] sm:$0xff] %vm17_vm1, %v49_v7 }
  0xfc   :  { %v55_v9 = vpop.xlane.xlu0 %54 }
  0xfd   :  { %v56_v10 = vadd.f32 %v55_v9, %v52_v8 }
  0xff   :  { %57 = vst.msk [vmem:[%s120_s3] sm:$0xff] %vm17_vm1, %v56_v10 }

</bundles_post_ra>
